<compile_context>
chip_gen: v7x
topology: tpu7x:2x2x1
jax: 0.10.0
libtpu: 0.0.40
codegen_flags: <defaults>
</compile_context>

<pallas_src>
import math
import numpy as np
import jax
import jax.numpy as jnp
from jax import lax
from jax.experimental import pallas as pl
from jax.experimental.pallas import tpu as pltpu

# ----------------------------- configuration (args) -----------------------------
NENTITY   = 2048         # nentity
NRELATION = 16           # nrelation  -> relation table has 2*NRELATION+1 rows
ENT_DIM   = 32           # args.ent_embed_dim == args.rel_embed_dim
EMB_D1    = 4            # args.conv_embed_shape1
EMB_D2    = ENT_DIM // EMB_D1          # 8
FSIZE     = 3            # args.conv_filter_size
CHANNELS  = 4            # args.conv_channels
BATCH     = 128          # effective batch (sublane / MXU-row friendly)

H_IN   = 2 * EMB_D1                     # 8  (e1 image stacked on rel image along H)
W_IN   = EMB_D2                         # 8
H_OUT  = H_IN - FSIZE + 1               # 6  (stride=1, padding=0)
W_OUT  = W_IN - FSIZE + 1               # 6
HW     = H_OUT * W_OUT                  # 36
CONV_HID = CHANNELS * HW                # 144 = fc input size
ER_DIM   = 2 * ENT_DIM                  # 64  (flattened stacked image)
BN_EPS   = 1e-5
BN_SCALE = 1.0 / math.sqrt(1.0 + BN_EPS)   # eval-mode BatchNorm (identity stats)


# --------------------------------- Pallas kernel ---------------------------------
def conve_score_kernel(h_ref, entT_ref, bent_ref, out_ref):
    """Score one entity tile: out = h @ ent_T + b.

    h_ref    : [B, 32]         bf16 hidden activations (resident; all pre-compute
                               hoisted to the wrapper)
    entT_ref : [32, ENT_TILE]  bf16 slice of entity_embedding^T (streamed)
    bent_ref : [1, ENT_TILE]   slice of self.b (streamed)
    out_ref  : [B, ENT_TILE]   f32 score tile
    """
    out_ref[...] = (
        jnp.dot(h_ref[...], entT_ref[...], preferred_element_type=jnp.float32)
        + bent_ref[...]
    )


# --------------------------------- kernel wrapper ---------------------------------
def _pick_ent_tile(n):
    # Big lane-dense tiles (amortize per-step overhead), but keep the grid a multiple
    # of 2 when possible so both v7x TensorCores get work. 512..4096 per tile.
    tile = max(512, min(4096, n // 2))
    while n % tile != 0:
        tile //= 2
    return max(tile, 128)


def conve_scores(h_bf16, ent_T_bf16, b_ent_row):
    B = h_bf16.shape[0]
    n = ent_T_bf16.shape[1]
    ent_tile = _pick_ent_tile(n)
    assert n % ent_tile == 0
    grid = (n // ent_tile,)
    return pl.pallas_call(
        conve_score_kernel,
        out_shape=jax.ShapeDtypeStruct((B, n), jnp.float32),
        grid=grid,
        in_specs=[
            pl.BlockSpec((B, ENT_DIM), lambda j: (0, 0)),          # h (resident)
            pl.BlockSpec((ENT_DIM, ent_tile), lambda j: (0, j)),   # ent_T tile (streamed)
            pl.BlockSpec((1, ent_tile), lambda j: (0, j)),         # b tile (streamed)
        ],
        out_specs=pl.BlockSpec((B, ent_tile), lambda j: (0, j)),
        compiler_params=pltpu.CompilerParams(
            dimension_semantics=("parallel",)),                    # megacore-safe
    )(h_bf16, ent_T_bf16, b_ent_row)


# ------------------------------------- glue ---------------------------------------
def kge_forward(sample, entity_embed, relation_embed, params, predict_mode="tail-batch"):
    """KGEModel.forward (eval) with the ConvE score function. Returns [B, nentity]."""
    head, rel, tail = sample[:, 0], sample[:, 1], sample[:, 2]
    # NOTE: matches the PyTorch spec exactly — the relation column (sample[:,1]) is
    # used for BOTH predict modes; the test dataloader supplies the inverse relation
    # id there for head-batch queries.
    relation = relation_embed[rel]
    if predict_mode == "tail-batch":
        e1 = entity_embed[head]
    elif predict_mode == "head-batch":
        e1 = entity_embed[tail]
    else:
        raise ValueError(predict_mode)

    # ----- batch-invariant-per-call pre-compute, hoisted out of the grid body -----
    # Row-major flatten of the stacked [2*D1, D2] image == concat(e1, rel).
    er = jnp.concatenate([e1, relation], axis=1)                      # [B, 64]
    # bn0 -> conv -> bn1 -> relu (BN scales already folded into w_conv_full)
    x1 = jnp.maximum(er @ params["w_conv_full"], 0.0)                 # [B, 144]
    # fc -> bn2 -> relu (BN scale folded into fc_wT / fc_b_row)
    h = jnp.maximum(x1 @ params["fc_wT"] + params["fc_b_row"], 0.0)   # [B, 32]
    h_bf16 = h.astype(jnp.bfloat16)
    # TODO(synk): the embedding gathers could be moved in-kernel via
    #             PrefetchScalarGridSpec + pl.Element row gather; kept in XLA glue
    #             here (they fuse with the tiny pre-compute and are batch-sized only).

    return conve_scores(h_bf16, params["ent_T_bf16"], params["b_ent_row"])


kge_forward_jit = jax.jit(kge_forward, static_argnames=("predict_mode",))


# --------------------------- pure-JAX reference (sanity) ---------------------------
def reference_forward(sample, entity_embed, relation_embed, conv_w, fc_w, fc_b, b_ent):
    head, rel = sample[:, 0], sample[:, 1]
    e1 = entity_embed[head]
    r  = relation_embed[rel]
    B = e1.shape[0]
    x = jnp.concatenate(
        [e1.reshape(B, 1, EMB_D1, EMB_D2), r.reshape(B, 1, EMB_D1, EMB_D2)], axis=2)
    x = x * BN_SCALE                                                  # bn0 (eval)
    y = lax.conv_general_dilated(
        x, conv_w, window_strides=(1, 1), padding="VALID",
        dimension_numbers=("NCHW", "OIHW", "NCHW"))
    y = jnp.maximum(y * BN_SCALE, 0.0)                                # bn1, relu
    y = y.reshape(B, -1)                                              # NCHW flatten
    y = y @ fc_w.T + fc_b
    y = jnp.maximum(y * BN_SCALE, 0.0)                                # bn2, relu
    return y @ entity_embed.T + b_ent


# -------------------------------------- main ---------------------------------------
if __name__ == "__main__":
    key = jax.random.PRNGKey(0)
    k_ent, k_rel, k_conv, k_fcw, k_fcb, k_smp = jax.random.split(key, 6)

    # nn.init.xavier_uniform_ on embeddings
    b_e = math.sqrt(6.0 / (NENTITY + ENT_DIM))
    entity_embedding = jax.random.uniform(
        k_ent, (NENTITY, ENT_DIM), jnp.float32, -b_e, b_e)
    n_rel_rows = 2 * NRELATION + 1
    b_r = math.sqrt(6.0 / (n_rel_rows + ENT_DIM))
    relation_embedding = jax.random.uniform(
        k_rel, (n_rel_rows, ENT_DIM), jnp.float32, -b_r, b_r)

    # ConvE params: conv (kaiming_normal, no bias), fc (xavier_normal + default bias),
    # b (zeros)
    conv_w = jax.random.normal(k_conv, (CHANNELS, 1, FSIZE, FSIZE), jnp.float32) \
             * math.sqrt(2.0 / (FSIZE * FSIZE))
    fc_w = jax.random.normal(k_fcw, (ENT_DIM, CONV_HID), jnp.float32) \
           * math.sqrt(2.0 / (ENT_DIM + CONV_HID))
    fc_b = jax.random.uniform(k_fcb, (ENT_DIM,), jnp.float32,
                              -1.0 / math.sqrt(CONV_HID), 1.0 / math.sqrt(CONV_HID))
    b_ent = jnp.zeros((NENTITY,), jnp.float32)      # self.b  (args.conv_bias = False)

    # ---- one-time parameter setup (all layout/algebra/BN folding happens here) ----
    # Fold (im2col + 3x3 conv) into a dense [64, 144] matrix by convolving the 64
    # basis images; column order is the PyTorch NCHW flatten (c-major), so fc_w.T is
    # used directly with no permutation.  bn0*bn1 eval scales are folded into it,
    # and the bn2 eval scale is folded into fc weight/bias.
    basis = jnp.eye(ER_DIM, dtype=jnp.float32).reshape(ER_DIM, 1, H_IN, W_IN)
    resp = lax.conv_general_dilated(
        basis, conv_w, window_strides=(1, 1), padding="VALID",
        dimension_numbers=("NCHW", "OIHW", "NCHW"))           # [64, C, 6, 6]
    w_conv_full = resp.reshape(ER_DIM, CONV_HID) * (BN_SCALE * BN_SCALE)   # [64, 144]

    params = dict(
        w_conv_full=w_conv_full,
        fc_wT=fc_w.T * BN_SCALE,                              # [144, 32], bn2 folded
        fc_b_row=(fc_b * BN_SCALE).reshape(1, ENT_DIM),
        ent_T_bf16=entity_embedding.T.astype(jnp.bfloat16),   # [32, nentity] bf16
        b_ent_row=b_ent.reshape(1, NENTITY),
    )

    # sample: [B, 4] = (head, relation, tail, inverse_relation)
    heads = jax.random.randint(k_smp, (BATCH,), 0, NENTITY)
    rels  = jax.random.randint(jax.random.fold_in(k_smp, 1), (BATCH,), 0, NRELATION)
    tails = jax.random.randint(jax.random.fold_in(k_smp, 2), (BATCH,), 0, NENTITY)
    inv_r = rels + NRELATION
    sample = jnp.stack([heads, rels, tails, inv_r], axis=1).astype(jnp.int32)

    scores = kge_forward_jit(sample, entity_embedding, relation_embedding, params,
                             predict_mode="tail-batch")
    scores = jax.block_until_ready(scores)
    assert scores.shape == (BATCH, NENTITY)

    ref = reference_forward(sample, entity_embedding, relation_embedding,
                            conv_w, fc_w, fc_b, b_ent)
    np.testing.assert_allclose(np.asarray(scores), np.asarray(ref),
                               rtol=2e-2, atol=2e-2)

    # TODO(synk): graphTransformer / reszeroGraphTransformer encoder and the training
    # losses are not part of the exercised code path (graph=None, eval mode).
    print("KERNEL_OK")
</pallas_src>

<mosaic_0001>
module attributes {stable_mosaic.version = 11 : i64} {
  func.func @conve_score_kernel(%arg0: i32, %arg1: memref<128x32xbf16, #tpu.memory_space<vmem>>, %arg2: memref<32x1024xbf16, #tpu.memory_space<vmem>>, %arg3: memref<1x1024xf32, #tpu.memory_space<vmem>>, %arg4: memref<128x1024xf32, #tpu.memory_space<vmem>>) attributes {dimension_semantics = [#tpu.dimension_semantics<parallel>], iteration_bounds = array<i64: 2>, scalar_prefetch = 0 : i64, scratch_operands = 0 : i64, tpu.core_type = #tpu.core_type<tc>, window_params = [{pipeline_mode = #tpu.pipeline_mode<synchronous>, transform_indices = @transform_0, window_bounds = array<i64: 128, 32>}, {transform_indices = @transform_1, window_bounds = array<i64: 32, 1024>}, {transform_indices = @transform_2, window_bounds = array<i64: 1, 1024>}, {transform_indices = @transform_3, window_bounds = array<i64: 128, 1024>}]} {
    %c0 = arith.constant 0 : index
    %c0_0 = arith.constant 0 : index
    %0 = vector.load %arg1[%c0, %c0_0] : memref<128x32xbf16, #tpu.memory_space<vmem>>, vector<128x32xbf16>
    %c0_1 = arith.constant 0 : index
    %c0_2 = arith.constant 0 : index
    %1 = vector.load %arg2[%c0_1, %c0_2] : memref<32x1024xbf16, #tpu.memory_space<vmem>>, vector<32x1024xbf16>
    %cst = arith.constant dense<0.000000e+00> : vector<128x1024xf32>
    %2 = tpu.matmul %0, %1, %cst {dimension_numbers = #tpu.dot_dimension_numbers<[1], [0], [0], [1], [0, 0, 1, 1], [], []>} : vector<128x32xbf16>, vector<32x1024xbf16>, vector<128x1024xf32> -> vector<128x1024xf32>
    %c0_3 = arith.constant 0 : index
    %c0_4 = arith.constant 0 : index
    %3 = vector.load %arg3[%c0_3, %c0_4] : memref<1x1024xf32, #tpu.memory_space<vmem>>, vector<1x1024xf32>
    %4 = vector.broadcast %3 : vector<1x1024xf32> to vector<128x1024xf32>
    %5 = arith.addf %2, %4 : vector<128x1024xf32>
    %c0_5 = arith.constant 0 : index
    %c0_6 = arith.constant 0 : index
    %6 = vector.load %arg4[%c0_5, %c0_6] : memref<128x1024xf32, #tpu.memory_space<vmem>>, vector<128x1024xf32>
    tpu.vector_store %arg4[%c0_5, %c0_6], %5 {strides = array<i32>} : memref<128x1024xf32, #tpu.memory_space<vmem>>, vector<128x1024xf32>,
    return
  }
  func.func @transform_0(%arg0: i32) -> (i32, i32) {
    %c0_i32 = arith.constant 0 : i32
    %c0_i32_0 = arith.constant 0 : i32
    %c0_i32_1 = arith.constant 0 : i32
    return %c0_i32, %c0_i32_0 : i32, i32
  }
  func.func @transform_1(%arg0: i32) -> (i32, i32) {
    %c0_i32 = arith.constant 0 : i32
    %c0_i32_0 = arith.constant 0 : i32
    return %c0_i32, %arg0 : i32, i32
  }
  func.func @transform_2(%arg0: i32) -> (i32, i32) {
    %c0_i32 = arith.constant 0 : i32
    %c0_i32_0 = arith.constant 0 : i32
    return %c0_i32, %arg0 : i32, i32
  }
  func.func @transform_3(%arg0: i32) -> (i32, i32) {
    %c0_i32 = arith.constant 0 : i32
    %c0_i32_0 = arith.constant 0 : i32
    return %c0_i32, %arg0 : i32, i32
  }
}

</mosaic_0001>

<bundles_post_ra>
// kernel: kge_forward.1
= control target key start
LH: loop header
LB: loop body
LE: loop exit
PB: predicated region body
PF: predicated region fallthrough
CT: control target
= control target key end

     0   :  { %8 = vsyncpa [#allocation4], 0  ;;  %s1885_s0 = inlined_call_operand.vmem [shape: bf16[128,32], index: 0, kind: input, shape index: {}]   ;;  %s1886_s1 = inlined_call_operand.vmem [shape: bf16[32,2048], index: 1, kind: input, shape index: {}]   ;;  %s1887_s2 = inlined_call_operand.vmem [shape: f32[1,2048], index: 2, kind: input, shape index: {}]   ;;  %s1888_s3 = inlined_call_operand.hbm [shape: f32[128,2048], index: 3, kind: output, shape index: {}]  }
   0x1   :  { %10 = vsyncpa [#allocation4 + $0x1], 0  ;;  %s1344_s12 = smov 0   ;;  %s1346_s13 = smov 0  }
   0x2   :  { %s1348_s14 = smov 0   ;;  %s1350_s15 = smov 0  }
   0x3 LB: > { %s1365_s16 = sadd.s32 4294967295, %s1317_s15   ;;  %s1131_s17 = sadd.s32 4294967294, %s1317_s15   ;;  %s1317_s15 = sphi %s1350_s15, %s1894_s15   ;;  %s1313_s14 = sphi %s1348_s14, %s1893_s14   ;;  %s1309_s13 = sphi %s1346_s13, %s1892_s13   ;;  %s1305_s12 = sphi %s1344_s12, %s1891_s12  }
   0x4   : > { %s1369_s18 = sadd.s32 1, %s1317_s15   ;;  %s44_s19 = sadd.s32 1, %s1313_s14 }
   0x5   : > { %s41_s20 = ssub.s32 %s1317_s15, %s1369_s18  ;;  %p51_p0 = scmp.ne.s32.totalorder %s1313_s14, %s1309_s13 }
   0x6   : > { %p42_p1 = scmp.eq.s32.totalorder %s41_s20, 0  ;;  %p52_p2 = scmp.eq.s32.totalorder %s1317_s15, 0 }
   0x7   : > { %p107_p3 = scmp.eq.s32.totalorder %s1365_s16, 1  ;;  %p112_p4 = scmp.ne.s32.totalorder %s1309_s13, %s1305_s12 }
   0x8   : > { %s1381_s21 = scalar_select %p42_p1, %s1313_s14, %s44_s19  }
   0x9   : > { %p53_p5 = por %p52_p2, %p51_p0  ;;  %p1383_p6 = por %p107_p3, %p51_p0 }
   0xa   : > { %p113_p7 = scmp.eq.s32.totalorder %s1131_s17, 1  ;;  %p1133_p9 = scmp.ge.s32.totalorder %s1317_s15, 2 }
   0xc   : > { %p1387_p8 = por %p113_p7, %p112_p4  ;;  %132 = sbr.rel (%p1133_p9) target bundleno = 31 (0x1f), region = 20 }
  0x13   : > { %135 = sbr.rel (!%p53_p5) target bundleno = 31 (0x1f), region = 24  ;;  %s137_s24 = sand.u32 (%p53_p5), 1, %s1313_s14  }
  0x14   : > { %s1202_s25 = sshll.u32 (%p53_p5), %s1317_s15, 5  ;;  %s1134_s26 = sshll.u32 (%p53_p5), %s137_s24, 7 }
  0x15   : > { %s1399_s29 = scalar_lea.vmem (%p53_p5), %s1886_s1, %s1202_s25  ;;  %s139_s30 = scalar_lea.vmem (%p53_p5), [#allocation2], %s1134_s26 }
  0x16   : > { %v155_v0 = vld [vmem:[%s1399_s29] sm:$0xff] (%p53_p5)  ;;  %v157_v1 = vld [vmem:[%s1399_s29 + $0x8] sm:$0xff] (%p53_p5)  ;;  %v159_v2 = vld [vmem:[%s1399_s29 + $0x10] sm:$0xff] (%p53_p5) }
  0x17   : > { %156 = vst [vmem:[%s139_s30] sm:$0xff] (%p53_p5), %v155_v0  ;;  %158 = vst [vmem:[%s139_s30 + $0x8] sm:$0xff] (%p53_p5), %v157_v1  ;;  %v161_v3 = vld [vmem:[%s1399_s29 + $0x18] sm:$0xff] (%p53_p5)  ;;  %v163_v4 = vld [vmem:[%s1399_s29 + $0x40] sm:$0xff] (%p53_p5) }
  0x18   : > { %160 = vst [vmem:[%s139_s30 + $0x10] sm:$0xff] (%p53_p5), %v159_v2  ;;  %v165_v5 = vld [vmem:[%s1399_s29 + $0x48] sm:$0xff] (%p53_p5)  ;;  %162 = vst [vmem:[%s139_s30 + $0x18] sm:$0xff] (%p53_p5), %v161_v3  ;;  %v167_v6 = vld [vmem:[%s1399_s29 + $0x50] sm:$0xff] (%p53_p5) }
  0x19   : > { %164 = vst [vmem:[%s139_s30 + $0x20] sm:$0xff] (%p53_p5), %v163_v4  ;;  %166 = vst [vmem:[%s139_s30 + $0x28] sm:$0xff] (%p53_p5), %v165_v5  ;;  %v169_v7 = vld [vmem:[%s1399_s29 + $0x58] sm:$0xff] (%p53_p5)  ;;  %v171_v8 = vld [vmem:[%s1399_s29 + $0x80] sm:$0xff] (%p53_p5) }
  0x1a   : > { %168 = vst [vmem:[%s139_s30 + $0x30] sm:$0xff] %v167_v6  ;;  %170 = vst [vmem:[%s139_s30 + $0x38] sm:$0xff] %v169_v7  ;;  %v173_v9 = vld [vmem:[%s1399_s29 + $0x88] sm:$0xff]  ;;  %v175_v10 = vld [vmem:[%s1399_s29 + $0x90] sm:$0xff] }
  0x1b   : > { %172 = vst [vmem:[%s139_s30 + $0x40] sm:$0xff] %v171_v8  ;;  %v177_v11 = vld [vmem:[%s1399_s29 + $0x98] sm:$0xff]  ;;  %174 = vst [vmem:[%s139_s30 + $0x48] sm:$0xff] %v173_v9  ;;  %v179_v12 = vld [vmem:[%s1399_s29 + $0xc0] sm:$0xff] }
  0x1c   : > { %176 = vst [vmem:[%s139_s30 + $0x50] sm:$0xff] %v175_v10  ;;  %178 = vst [vmem:[%s139_s30 + $0x58] sm:$0xff] %v177_v11  ;;  %v181_v13 = vld [vmem:[%s1399_s29 + $0xc8] sm:$0xff]  ;;  %v183_v14 = vld [vmem:[%s1399_s29 + $0xd0] sm:$0xff] }
  0x1d   : > { %180 = vst [vmem:[%s139_s30 + $0x60] sm:$0xff] %v179_v12  ;;  %182 = vst [vmem:[%s139_s30 + $0x68] sm:$0xff] %v181_v13  ;;  %v185_v15 = vld [vmem:[%s1399_s29 + $0xd8] sm:$0xff] }
  0x1e   : > { %184 = vst [vmem:[%s139_s30 + $0x70] sm:$0xff] %v183_v14  ;;  %186 = vst [vmem:[%s139_s30 + $0x78] sm:$0xff] %v185_v15 }
  0x1f PF: > { %p1137_p10 = scmp.ge.s32.totalorder %s1317_s15, 1  ;;  %p199_p11 = scmp.lt.s32.totalorder %s1317_s15, 3 }
  0x21   : > { %p200_p12 = pnand %p1137_p10, %p199_p11 }
  0x22   : > { %s1420_s4 = sand.u32 (!%p200_p12), 1, %s1309_s13   ;;  %v1319_v16 = vmov (!%p200_p12), 0   ;;  %v1442_v38 = vld [vmem:[%s1885_s0] sm:$0xff] (!%p200_p12)   ;;  %vm435_vm0 = vcmask (!%p200_p12), 261120   ;;  %v1248_v50 = vld [vmem:[%s1885_s0 + $0x8] sm:$0xff] (!%p200_p12)   ;;  %v1249_v51 = vld [vmem:[%s1885_s0 + $0x10] sm:$0xff] (!%p200_p12)   ;;  %v275_v57 = vlaneseq (!%p200_p12) }
  0x23   : > { %203 = sbr.rel (%p200_p12) target bundleno = 402 (0x192), region = 51  ;;  %s1138_s5 = sshll.u32 (!%p200_p12), %s1420_s4, 7  ;;  %492 = vmatprep.mubr.bf16.mxu0 (!%p200_p12), %v1319_v16  ;;  %605 = vmatprep.mubr.bf16.mxu1 (!%p200_p12), %v1319_v16  ;;  %v1250_v52 = vld [vmem:[%s1885_s0 + $0x18] sm:$0xff] (!%p200_p12)   ;;  %v1251_v53 = vld [vmem:[%s1885_s0 + $0x20] sm:$0xff] (!%p200_p12)   ;;  %v1252_v54 = vld [vmem:[%s1885_s0 + $0x28] sm:$0xff] (!%p200_p12)  }
  0x24   : > { %s1425_s6 = scalar_lea.vmem (!%p200_p12), [#allocation2], %s1138_s5  ;;  %v1253_v55 = vld [vmem:[%s1885_s0 + $0x30] sm:$0xff] (!%p200_p12)   ;;  %v1254_v56 = vld [vmem:[%s1885_s0 + $0x38] sm:$0xff] (!%p200_p12)   ;;  %v1536_v58 = vshrl.u32 (!%p200_p12), %v275_v57, 7  ;;  %s1139_s10 = sshll.u32 (!%p200_p12), %s1420_s4, 10 }
  0x25   : > { %v257_v17 = vld [vmem:[%s1425_s6] sm:$0xff] (!%p200_p12)  ;;  %v258_v19 = vld [vmem:[%s1425_s6 + $0x8] sm:$0xff] (!%p200_p12)  ;;  %v259_v30 = vld [vmem:[%s1425_s6 + $0x10] sm:$0xff] (!%p200_p12)  ;;  %s1563_s11 = scalar_lea.vmem (!%p200_p12), [#allocation3], %s1139_s10  ;;  %s1203_s17 = sshll.u32 (!%p200_p12), %s1365_s16, 10 }
  0x26   : > { %v261_v18 = vld [vmem:[%s1425_s6 + $0x20] sm:$0xff] (!%p200_p12)  ;;  %v262_v21 = vld [vmem:[%s1425_s6 + $0x28] sm:$0xff] (!%p200_p12)  ;;  %v263_v32 = vld [vmem:[%s1425_s6 + $0x30] sm:$0xff] (!%p200_p12)  ;;  %v277_v59 = vsub.s32 (!%p200_p12), 0, %v1536_v58  ;;  %v285_v61 = vsub.s32 (!%p200_p12), 2, %v1536_v58  ;;  %v281_v62 = vsub.s32 (!%p200_p12), 1, %v1536_v58  ;;  %s1829_s24 = scalar_lea.hbm (!%p200_p12), %s1888_s3, %s1203_s17 }
  0x27   : > { %v1150_v20 = vcombine.high (!%p200_p12), %v257_v17, %v261_v18  ;;  %v1149_v22 = vcombine.low (!%p200_p12), %v257_v17, %v261_v18  ;;  %v265_v23 = vld [vmem:[%s1425_s6 + $0x40] sm:$0xff] (!%p200_p12)  ;;  %v1152_v25 = vcombine.high (!%p200_p12), %v258_v19, %v262_v21  ;;  %v1151_v26 = vcombine.low (!%p200_p12), %v258_v19, %v262_v21  ;;  %v266_v28 = vld [vmem:[%s1425_s6 + $0x48] sm:$0xff] (!%p200_p12)  ;;  %v260_v33 = vld [vmem:[%s1425_s6 + $0x18] sm:$0xff] (!%p200_p12)  ;;  %s1054_s19 = sshll.u32 (!%p200_p12), %s1563_s11, 4  ;;  %s1041_s25 = scalar_lea.sflag (!%p200_p12), [#allocation4], %s1420_s4  ;;  %s1835_s19 = int_to_ptr.vmem [resolvable:$true] %s1054_s19 }
  0x28   : > { %v269_v24 = vld [vmem:[%s1425_s6 + $0x60] sm:$0xff] (!%p200_p12)  ;;  %v270_v29 = vld [vmem:[%s1425_s6 + $0x68] sm:$0xff] (!%p200_p12)  ;;  %v264_v34 = vld [vmem:[%s1425_s6 + $0x38] sm:$0xff] (!%p200_p12)  ;;  %v1154_v37 = vcombine.high (!%p200_p12), %v259_v30, %v263_v32  ;;  %v1153_v43 = vcombine.low (!%p200_p12), %v259_v30, %v263_v32  ;;  %v289_v63 = vsub.s32 (!%p200_p12), 3, %v1536_v58  ;;  %s1255_s26 = scalar_lea.vmem (!%p200_p12), %s1835_s19, 16384  ;;  %s1320_s27 = smov (!%p200_p12), [#allocation3]  }
  0x29   : > { %v1158_v27 = vcombine.high (!%p200_p12), %v265_v23, %v269_v24  ;;  %460 = vmatprep.subr.bf16.mxu0 (!%p200_p12), %v1150_v20  ;;  %v1160_v31 = vcombine.high (!%p200_p12), %v266_v28, %v270_v29  ;;  %573 = vmatprep.subr.bf16.mxu1 (!%p200_p12), %v1152_v25  ;;  %v1157_v35 = vcombine.low (!%p200_p12), %v265_v23, %v269_v24  ;;  %v267_v40 = vld [vmem:[%s1425_s6 + $0x50] sm:$0xff] (!%p200_p12)  ;;  %v268_v42 = vld [vmem:[%s1425_s6 + $0x58] sm:$0xff] (!%p200_p12)  ;;  %p1256_p0 = scmp.ne.s32.totalorder (!%p200_p12), %s1835_s19, %s1255_s26  ;;  %s1259_s28 = sshll.u32 (!%p200_p12), %s1320_s27, 4  ;;  %s1260_s28 = int_to_ptr.vmem [resolvable:$false] %s1259_s28 }
  0x2a   : > { %461 = vmatpush1.bf16.msra.mxu0 %v1149_v22  ;;  %574 = vmatpush1.bf16.msra.mxu1 %v1151_v26  ;;  %v1159_v36 = vcombine.low %v266_v28, %v270_v29  ;;  %v1156_v39 = vcombine.high %v260_v33, %v264_v34  ;;  %v271_v41 = vld [vmem:[%s1425_s6 + $0x70] sm:$0xff]  ;;  %v272_v44 = vld [vmem:[%s1425_s6 + $0x78] sm:$0xff]  ;;  %v1155_v45 = vcombine.low %v260_v33, %v264_v34  ;;  %s1140_s6 = sshll.u32 %s1365_s16, 3  ;;  %s1261_s29 = scalar_lea.vmem %s1260_s28, 32768 }
  0x2b   : > { %462 = vmatprep.subr.bf16.mxu0 %v1158_v27  ;;  %575 = vmatprep.subr.bf16.mxu1 %v1160_v31  ;;  %v1162_v46 = vcombine.high %v267_v40, %v271_v41  ;;  %v1164_v47 = vcombine.high %v268_v42, %v272_v44  ;;  %v1161_v48 = vcombine.low %v267_v40, %v271_v41  ;;  %p235_p13 = scmp.lt.s32.totalorder %s1140_s6, 15  ;;  %p1257_p1 = pnand %p1256_p0, %p1383_p6 }
  0x2c   : > { %v1163_v49 = vcombine.low %v268_v42, %v272_v44  ;;  %p1262_p3 = scmp.lt.s32.totalorder %s1835_s19, %s1260_s28  ;;  %p1263_p4 = scmp.lt.s32.totalorder %s1261_s29, %s1255_s26 }
  0x2d   : > { %s1896_s6 = smov (!%p235_p13, %s1140_s6), 15  ;;  %p1258_p2 = pneg %p1257_p1 }
  0x2e   : > { %463 = vmatpush1.bf16.msra.mxu0 %v1157_v35  ;;  %576 = vmatpush1.bf16.msra.mxu1 %v1159_v36  ;;  %s237_s9 = scalar_lea.vmem %s1887_s2, %s1896_s6  ;;  %p1264_p5 = por %p1263_p4, %p1262_p3 }
  0x2f   : > { %686 = vmatprep.subr.bf16.mxu0 %v1154_v37  ;;  %799 = vmatprep.subr.bf16.mxu1 %v1156_v39  ;;  %v1542_v60 = vld [vmem:[%s237_s9] sm:$0xff] }
  0x30   : > { %v1549_v0 = vrot.slane %v1542_v60, %v277_v59  ;;  %v1552_v1 = vrot.slane %v1542_v60, %v285_v61  ;;  %v1555_v2 = vrot.slane %v1542_v60, %v281_v62  ;;  %v1558_v3 = vrot.slane %v1542_v60, %v289_v63  ;;  %p1265_p7 = pnand %p1264_p5, %p1258_p2 }
  0x31   : > { %1165 = vmatmul.mubr.msk.bf16.vlgmr.msra.gmra.mrb[0].mxu0 %vm435_vm0, %v1442_v38  ;;  %1173 = vmatmul.mubr.msk.bf16.vlgmr.msra.gmra.mrb[0].mxu1 %vm435_vm0, %v1442_v38 }
  0x32   : > { %687 = vmatpush1.bf16.msra.mxu0 %v1153_v43  ;;  %800 = vmatpush1.bf16.msra.mxu1 %v1155_v45 }
  0x33   : > { %502 = vmatprep.mubr.bf16.mxu0 %v1319_v16  ;;  %615 = vmatprep.mubr.bf16.mxu1 %v1319_v16 }
  0x34   : > { %688 = vmatprep.subr.bf16.mxu0 %v1162_v46  ;;  %801 = vmatprep.subr.bf16.mxu1 %v1164_v47 }
  0x36   : > { %689 = vmatpush1.bf16.msra.mxu0 %v1161_v48  ;;  %802 = vmatpush1.bf16.msra.mxu1 %v1163_v49 }
  0x39   : > { %1166 = vmatmul.mubr.msk.bf16.gmra.mrb[4].mxu0 %vm435_vm0, %v1248_v50  ;;  %1174 = vmatmul.mubr.msk.bf16.gmra.mrb[4].mxu1 %vm435_vm0, %v1248_v50 }
  0x3a   : > { %512 = vmatprep.mubr.bf16.mxu0 %v1319_v16  ;;  %625 = vmatprep.mubr.bf16.mxu1 %v1319_v16 }
  0x41   : > { %1167 = vmatmul.mubr.msk.bf16.gmra.mrb[8].mxu0 %vm435_vm0, %v1249_v51  ;;  %1175 = vmatmul.mubr.msk.bf16.gmra.mrb[8].mxu1 %vm435_vm0, %v1249_v51 }
  0x42   : > { %522 = vmatprep.mubr.bf16.mxu0 %v1319_v16  ;;  %635 = vmatprep.mubr.bf16.mxu1 %v1319_v16 }
  0x49   : > { %1168 = vmatmul.mubr.msk.bf16.gmra.mrb[12].mxu0 %vm435_vm0, %v1250_v52  ;;  %1176 = vmatmul.mubr.msk.bf16.gmra.mrb[12].mxu1 %vm435_vm0, %v1250_v52 }
  0x4a   : > { %532 = vmatprep.mubr.bf16.mxu0 %v1319_v16  ;;  %645 = vmatprep.mubr.bf16.mxu1 %v1319_v16 }
  0x51   : > { %1169 = vmatmul.mubr.msk.bf16.gmra.mrb[16].mxu0 %vm435_vm0, %v1251_v53  ;;  %1177 = vmatmul.mubr.msk.bf16.gmra.mrb[16].mxu1 %vm435_vm0, %v1251_v53 }
  0x52   : > { %542 = vmatprep.mubr.bf16.mxu0 %v1319_v16  ;;  %655 = vmatprep.mubr.bf16.mxu1 %v1319_v16 }
  0x59   : > { %1170 = vmatmul.mubr.msk.bf16.gmra.mrb[20].mxu0 %vm435_vm0, %v1252_v54  ;;  %1178 = vmatmul.mubr.msk.bf16.gmra.mrb[20].mxu1 %vm435_vm0, %v1252_v54 }
  0x5a   : > { %552 = vmatprep.mubr.bf16.mxu0 %v1319_v16  ;;  %665 = vmatprep.mubr.bf16.mxu1 %v1319_v16 }
  0x61   : > { %1171 = vmatmul.mubr.msk.bf16.gmra.mrb[24].mxu0 %vm435_vm0, %v1253_v55  ;;  %1179 = vmatmul.mubr.msk.bf16.gmra.mrb[24].mxu1 %vm435_vm0, %v1253_v55 }
  0x62   : > { %562 = vmatprep.mubr.bf16.mxu0 %v1319_v16  ;;  %675 = vmatprep.mubr.bf16.mxu1 %v1319_v16 }
  0x69   : > { %1172 = vmatmul.mubr.msk.bf16.gmra.mrb[28].mxu0 %vm435_vm0, %v1254_v56  ;;  %1180 = vmatmul.mubr.msk.bf16.gmra.mrb[28].mxu1 %vm435_vm0, %v1254_v56 }
  0x6a   : > { %718 = vmatprep.mubr.bf16.mxu0 %v1319_v16  ;;  %831 = vmatprep.mubr.bf16.mxu1 %v1319_v16 }
  0x71   : > { %1181 = vmatmul.mubr.msk.bf16.vlgmr.msra.gmra.mrb[32].mxu0 %vm435_vm0, %v1442_v38  ;;  %1189 = vmatmul.mubr.msk.bf16.vlgmr.msra.gmra.mrb[32].mxu1 %vm435_vm0, %v1442_v38 }
  0x72   : > { %728 = vmatprep.mubr.bf16.mxu0 %v1319_v16  ;;  %841 = vmatprep.mubr.bf16.mxu1 %v1319_v16 }
  0x79   : > { %1182 = vmatmul.mubr.msk.bf16.gmra.mrb[36].mxu0 %vm435_vm0, %v1248_v50  ;;  %1190 = vmatmul.mubr.msk.bf16.gmra.mrb[36].mxu1 %vm435_vm0, %v1248_v50 }
  0x7a   : > { %738 = vmatprep.mubr.bf16.mxu0 %v1319_v16  ;;  %851 = vmatprep.mubr.bf16.mxu1 %v1319_v16 }
  0x81   : > { %1183 = vmatmul.mubr.msk.bf16.gmra.mrb[40].mxu0 %vm435_vm0, %v1249_v51  ;;  %1191 = vmatmul.mubr.msk.bf16.gmra.mrb[40].mxu1 %vm435_vm0, %v1249_v51 }
  0x82   : > { %748 = vmatprep.mubr.bf16.mxu0 %v1319_v16  ;;  %861 = vmatprep.mubr.bf16.mxu1 %v1319_v16 }
  0x89   : > { %1184 = vmatmul.mubr.msk.bf16.gmra.mrb[44].mxu0 %vm435_vm0, %v1250_v52  ;;  %1192 = vmatmul.mubr.msk.bf16.gmra.mrb[44].mxu1 %vm435_vm0, %v1250_v52 }
  0x8a   : > { %758 = vmatprep.mubr.bf16.mxu0 %v1319_v16  ;;  %871 = vmatprep.mubr.bf16.mxu1 %v1319_v16 }
  0x91   : > { %1185 = vmatmul.mubr.msk.bf16.gmra.mrb[48].mxu0 %vm435_vm0, %v1251_v53  ;;  %1193 = vmatmul.mubr.msk.bf16.gmra.mrb[48].mxu1 %vm435_vm0, %v1251_v53 }
  0x92   : > { %768 = vmatprep.mubr.bf16.mxu0 %v1319_v16  ;;  %881 = vmatprep.mubr.bf16.mxu1 %v1319_v16 }
  0x99   : > { %1186 = vmatmul.mubr.msk.bf16.gmra.mrb[52].mxu0 %vm435_vm0, %v1252_v54  ;;  %1194 = vmatmul.mubr.msk.bf16.gmra.mrb[52].mxu1 %vm435_vm0, %v1252_v54 }
  0x9a   : > { %778 = vmatprep.mubr.bf16.mxu0 %v1319_v16  ;;  %891 = vmatprep.mubr.bf16.mxu1 %v1319_v16 }
  0xa1   : > { %1187 = vmatmul.mubr.msk.bf16.gmra.mrb[56].mxu0 %vm435_vm0, %v1253_v55  ;;  %1195 = vmatmul.mubr.msk.bf16.gmra.mrb[56].mxu1 %vm435_vm0, %v1253_v55 }
  0xa2   : > { %788 = vmatprep.mubr.bf16.mxu0 %v1319_v16  ;;  %901 = vmatprep.mubr.bf16.mxu1 %v1319_v16 }
  0xa9   : > { %1188 = vmatmul.mubr.msk.bf16.gmra.mrb[60].mxu0 %vm435_vm0, %v1254_v56  ;;  %1196 = vmatmul.mubr.msk.bf16.gmra.mrb[60].mxu1 %vm435_vm0, %v1254_v56 }
 0x104   : > { %v494_v4 = vpop.f32.mrb[0].mxu0  ;;  %v607_v6 = vpop.f32.mrb[0].mxu1 }
 0x105   : > { %v495_v5 = vadd.f32 %v494_v4, %v1549_v0  ;;  %v496_v7 = vpop.f32.mrb[1].mxu0  ;;  %v608_v8 = vadd.f32 %v607_v6, %v1552_v1  ;;  %v609_v10 = vpop.f32.mrb[1].mxu1 }
 0x106   : > { %v497_v9 = vadd.f32 %v496_v7, %v1555_v2  ;;  %v498_v11 = vpop.f32.mrb[2].mxu0  ;;  %v610_v12 = vadd.f32 %v609_v10, %v1558_v3  ;;  %v611_v14 = vpop.f32.mrb[2].mxu1 }
 0x107   : > { %912 = vst [vmem:[%s1563_s11] sm:$0xff] %v495_v5  ;;  %v499_v13 = vadd.f32 %v498_v11, %v1549_v0  ;;  %v500_v15 = vpop.f32.mrb[3].mxu0  ;;  %914 = vst [vmem:[%s1563_s11 + $0x10] sm:$0xff] %v608_v8  ;;  %v612_v16 = vadd.f32 %v611_v14, %v1552_v1  ;;  %v613_v18 = vpop.f32.mrb[3].mxu1 }
 0x108   : > { %913 = vst [vmem:[%s1563_s11 + $0x8] sm:$0xff] %v497_v9  ;;  %v501_v17 = vadd.f32 %v500_v15, %v1555_v2  ;;  %915 = vst [vmem:[%s1563_s11 + $0x18] sm:$0xff] %v610_v12  ;;  %v614_v19 = vadd.f32 %v613_v18, %v1558_v3 }
 0x109   : > { %920 = vst [vmem:[%s1563_s11 + $0x40] sm:$0xff] %v499_v13  ;;  %922 = vst [vmem:[%s1563_s11 + $0x50] sm:$0xff] %v612_v16 }
 0x10a   : > { %921 = vst [vmem:[%s1563_s11 + $0x48] sm:$0xff] %v501_v17  ;;  %923 = vst [vmem:[%s1563_s11 + $0x58] sm:$0xff] %v614_v19 }
 0x10c   : > { %v504_v20 = vpop.f32.mrb[4].mxu0  ;;  %v617_v22 = vpop.f32.mrb[4].mxu1 }
 0x10d   : > { %v505_v21 = vadd.f32 %v504_v20, %v1549_v0  ;;  %v506_v23 = vpop.f32.mrb[5].mxu0  ;;  %v618_v24 = vadd.f32 %v617_v22, %v1552_v1  ;;  %v619_v26 = vpop.f32.mrb[5].mxu1 }
 0x10e   : > { %v507_v25 = vadd.f32 %v506_v23, %v1555_v2  ;;  %v508_v27 = vpop.f32.mrb[6].mxu0  ;;  %v620_v28 = vadd.f32 %v619_v26, %v1558_v3  ;;  %v621_v30 = vpop.f32.mrb[6].mxu1 }
 0x10f   : > { %928 = vst [vmem:[%s1563_s11 + $0x80] sm:$0xff] %v505_v21  ;;  %v509_v29 = vadd.f32 %v508_v27, %v1549_v0  ;;  %v510_v31 = vpop.f32.mrb[7].mxu0  ;;  %930 = vst [vmem:[%s1563_s11 + $0x90] sm:$0xff] %v618_v24  ;;  %v622_v32 = vadd.f32 %v621_v30, %v1552_v1  ;;  %v623_v34 = vpop.f32.mrb[7].mxu1 }
 0x110   : > { %929 = vst [vmem:[%s1563_s11 + $0x88] sm:$0xff] %v507_v25  ;;  %v511_v33 = vadd.f32 %v510_v31, %v1555_v2  ;;  %931 = vst [vmem:[%s1563_s11 + $0x98] sm:$0xff] %v620_v28  ;;  %v624_v35 = vadd.f32 %v623_v34, %v1558_v3 }
 0x111   : > { %936 = vst [vmem:[%s1563_s11 + $0xc0] sm:$0xff] %v509_v29  ;;  %938 = vst [vmem:[%s1563_s11 + $0xd0] sm:$0xff] %v622_v32 }
 0x112   : > { %937 = vst [vmem:[%s1563_s11 + $0xc8] sm:$0xff] %v511_v33  ;;  %939 = vst [vmem:[%s1563_s11 + $0xd8] sm:$0xff] %v624_v35 }
 0x114   : > { %v514_v36 = vpop.f32.mrb[8].mxu0  ;;  %v627_v38 = vpop.f32.mrb[8].mxu1 }
 0x115   : > { %v515_v37 = vadd.f32 %v514_v36, %v1549_v0  ;;  %v516_v39 = vpop.f32.mrb[9].mxu0  ;;  %v628_v40 = vadd.f32 %v627_v38, %v1552_v1  ;;  %v629_v42 = vpop.f32.mrb[9].mxu1 }
 0x116   : > { %v517_v41 = vadd.f32 %v516_v39, %v1555_v2  ;;  %v518_v43 = vpop.f32.mrb[10].mxu0  ;;  %v630_v44 = vadd.f32 %v629_v42, %v1558_v3  ;;  %v631_v46 = vpop.f32.mrb[10].mxu1 }
 0x117   : > { %944 = vst [vmem:[%s1563_s11 + $0x100] sm:$0xff] %v515_v37  ;;  %v519_v45 = vadd.f32 %v518_v43, %v1549_v0  ;;  %v520_v47 = vpop.f32.mrb[11].mxu0  ;;  %946 = vst [vmem:[%s1563_s11 + $0x110] sm:$0xff] %v628_v40  ;;  %v632_v48 = vadd.f32 %v631_v46, %v1552_v1  ;;  %v633_v50 = vpop.f32.mrb[11].mxu1 }
 0x118   : > { %945 = vst [vmem:[%s1563_s11 + $0x108] sm:$0xff] %v517_v41  ;;  %v521_v49 = vadd.f32 %v520_v47, %v1555_v2  ;;  %947 = vst [vmem:[%s1563_s11 + $0x118] sm:$0xff] %v630_v44  ;;  %v634_v51 = vadd.f32 %v633_v50, %v1558_v3 }
 0x119   : > { %952 = vst [vmem:[%s1563_s11 + $0x140] sm:$0xff] %v519_v45  ;;  %954 = vst [vmem:[%s1563_s11 + $0x150] sm:$0xff] %v632_v48 }
 0x11a   : > { %953 = vst [vmem:[%s1563_s11 + $0x148] sm:$0xff] %v521_v49  ;;  %955 = vst [vmem:[%s1563_s11 + $0x158] sm:$0xff] %v634_v51 }
 0x11c   : > { %v524_v52 = vpop.f32.mrb[12].mxu0  ;;  %v637_v54 = vpop.f32.mrb[12].mxu1 }
 0x11d   : > { %v525_v53 = vadd.f32 %v524_v52, %v1549_v0  ;;  %v526_v55 = vpop.f32.mrb[13].mxu0  ;;  %v638_v56 = vadd.f32 %v637_v54, %v1552_v1  ;;  %v639_v59 = vpop.f32.mrb[13].mxu1 }
 0x11e   : > { %v527_v57 = vadd.f32 %v526_v55, %v1555_v2  ;;  %v528_v61 = vpop.f32.mrb[14].mxu0  ;;  %v640_v62 = vadd.f32 %v639_v59, %v1558_v3  ;;  %v641_v4 = vpop.f32.mrb[14].mxu1 }
 0x11f   : > { %960 = vst [vmem:[%s1563_s11 + $0x180] sm:$0xff] %v525_v53  ;;  %v529_v63 = vadd.f32 %v528_v61, %v1549_v0  ;;  %v530_v5 = vpop.f32.mrb[15].mxu0  ;;  %962 = vst [vmem:[%s1563_s11 + $0x190] sm:$0xff] %v638_v56  ;;  %v642_v6 = vadd.f32 %v641_v4, %v1552_v1  ;;  %v643_v8 = vpop.f32.mrb[15].mxu1  ;;  %v293_v4 = vsub.s32 4, %v1536_v58 }
 0x120   : > { %961 = vst [vmem:[%s1563_s11 + $0x188] sm:$0xff] %v527_v57  ;;  %v531_v7 = vadd.f32 %v530_v5, %v1555_v2  ;;  %963 = vst [vmem:[%s1563_s11 + $0x198] sm:$0xff] %v640_v62  ;;  %v644_v9 = vadd.f32 %v643_v8, %v1558_v3 }
 0x121   : > { %968 = vst [vmem:[%s1563_s11 + $0x1c0] sm:$0xff] %v529_v63  ;;  %970 = vst [vmem:[%s1563_s11 + $0x1d0] sm:$0xff] %v642_v6 }
 0x122   : > { %969 = vst [vmem:[%s1563_s11 + $0x1c8] sm:$0xff] %v531_v7  ;;  %971 = vst [vmem:[%s1563_s11 + $0x1d8] sm:$0xff] %v644_v9  ;;  %v301_v9 = vsub.s32 6, %v1536_v58 }
 0x124   : > { %v534_v10 = vpop.f32.mrb[16].mxu0  ;;  %v647_v12 = vpop.f32.mrb[16].mxu1 }
 0x125   : > { %v535_v11 = vadd.f32 %v534_v10, %v1549_v0  ;;  %v536_v13 = vpop.f32.mrb[17].mxu0  ;;  %v648_v14 = vadd.f32 %v647_v12, %v1552_v1  ;;  %v649_v16 = vpop.f32.mrb[17].mxu1  ;;  %v297_v10 = vsub.s32 5, %v1536_v58 }
 0x126   : > { %v537_v15 = vadd.f32 %v536_v13, %v1555_v2  ;;  %v538_v17 = vpop.f32.mrb[18].mxu0  ;;  %v650_v18 = vadd.f32 %v649_v16, %v1558_v3  ;;  %v651_v20 = vpop.f32.mrb[18].mxu1 }
 0x127   : > { %976 = vst [vmem:[%s1563_s11 + $0x200] sm:$0xff] %v535_v11  ;;  %v539_v19 = vadd.f32 %v538_v17, %v1549_v0  ;;  %v540_v21 = vpop.f32.mrb[19].mxu0  ;;  %978 = vst [vmem:[%s1563_s11 + $0x210] sm:$0xff] %v648_v14  ;;  %v652_v22 = vadd.f32 %v651_v20, %v1552_v1  ;;  %v653_v24 = vpop.f32.mrb[19].mxu1  ;;  %v1692_v20 = vrot.slane %v1542_v60, %v293_v4 }
 0x128   : > { %977 = vst [vmem:[%s1563_s11 + $0x208] sm:$0xff] %v537_v15  ;;  %v541_v23 = vadd.f32 %v540_v21, %v1555_v2  ;;  %979 = vst [vmem:[%s1563_s11 + $0x218] sm:$0xff] %v650_v18  ;;  %v654_v25 = vadd.f32 %v653_v24, %v1558_v3  ;;  %v305_v15 = vsub.s32 7, %v1536_v58  ;;  %v1700_v58 = vrot.slane %v1542_v60, %v297_v10 }
 0x129   : > { %984 = vst [vmem:[%s1563_s11 + $0x240] sm:$0xff] %v539_v19  ;;  %986 = vst [vmem:[%s1563_s11 + $0x250] sm:$0xff] %v652_v22 }
 0x12a   : > { %985 = vst [vmem:[%s1563_s11 + $0x248] sm:$0xff] %v541_v23  ;;  %987 = vst [vmem:[%s1563_s11 + $0x258] sm:$0xff] %v654_v25 }
 0x12c   : > { %v544_v26 = vpop.f32.mrb[20].mxu0  ;;  %v657_v28 = vpop.f32.mrb[20].mxu1 }
 0x12d   : > { %v545_v27 = vadd.f32 %v544_v26, %v1549_v0  ;;  %v546_v29 = vpop.f32.mrb[21].mxu0  ;;  %v658_v30 = vadd.f32 %v657_v28, %v1552_v1  ;;  %v659_v32 = vpop.f32.mrb[21].mxu1 }
 0x12e   : > { %v547_v31 = vadd.f32 %v546_v29, %v1555_v2  ;;  %v548_v33 = vpop.f32.mrb[22].mxu0  ;;  %v660_v34 = vadd.f32 %v659_v32, %v1558_v3  ;;  %v661_v36 = vpop.f32.mrb[22].mxu1 }
 0x12f   : > { %992 = vst [vmem:[%s1563_s11 + $0x280] sm:$0xff] %v545_v27  ;;  %v549_v35 = vadd.f32 %v548_v33, %v1549_v0  ;;  %v550_v37 = vpop.f32.mrb[23].mxu0  ;;  %994 = vst [vmem:[%s1563_s11 + $0x290] sm:$0xff] %v658_v30  ;;  %v662_v38 = vadd.f32 %v661_v36, %v1552_v1  ;;  %v663_v40 = vpop.f32.mrb[23].mxu1 }
 0x130   : > { %993 = vst [vmem:[%s1563_s11 + $0x288] sm:$0xff] %v547_v31  ;;  %v551_v39 = vadd.f32 %v550_v37, %v1555_v2  ;;  %995 = vst [vmem:[%s1563_s11 + $0x298] sm:$0xff] %v660_v34  ;;  %v664_v41 = vadd.f32 %v663_v40, %v1558_v3 }
 0x131   : > { %1000 = vst [vmem:[%s1563_s11 + $0x2c0] sm:$0xff] %v549_v35  ;;  %1002 = vst [vmem:[%s1563_s11 + $0x2d0] sm:$0xff] %v662_v38 }
 0x132   : > { %1001 = vst [vmem:[%s1563_s11 + $0x2c8] sm:$0xff] %v551_v39  ;;  %1003 = vst [vmem:[%s1563_s11 + $0x2d8] sm:$0xff] %v664_v41 }
 0x134   : > { %v554_v42 = vpop.f32.mrb[24].mxu0  ;;  %v667_v44 = vpop.f32.mrb[24].mxu1 }
 0x135   : > { %v555_v43 = vadd.f32 %v554_v42, %v1549_v0  ;;  %v556_v45 = vpop.f32.mrb[25].mxu0  ;;  %v668_v46 = vadd.f32 %v667_v44, %v1552_v1  ;;  %v669_v48 = vpop.f32.mrb[25].mxu1 }
 0x136   : > { %v557_v47 = vadd.f32 %v556_v45, %v1555_v2  ;;  %v558_v49 = vpop.f32.mrb[26].mxu0  ;;  %v670_v50 = vadd.f32 %v669_v48, %v1558_v3  ;;  %v671_v52 = vpop.f32.mrb[26].mxu1 }
 0x137   : > { %1008 = vst [vmem:[%s1563_s11 + $0x300] sm:$0xff] %v555_v43  ;;  %v559_v51 = vadd.f32 %v558_v49, %v1549_v0  ;;  %v560_v53 = vpop.f32.mrb[27].mxu0  ;;  %1010 = vst [vmem:[%s1563_s11 + $0x310] sm:$0xff] %v668_v46  ;;  %v672_v54 = vadd.f32 %v671_v52, %v1552_v1  ;;  %v673_v56 = vpop.f32.mrb[27].mxu1 }
 0x138   : > { %1009 = vst [vmem:[%s1563_s11 + $0x308] sm:$0xff] %v557_v47  ;;  %v561_v55 = vadd.f32 %v560_v53, %v1555_v2  ;;  %1011 = vst [vmem:[%s1563_s11 + $0x318] sm:$0xff] %v670_v50  ;;  %v674_v57 = vadd.f32 %v673_v56, %v1558_v3 }
 0x139   : > { %1016 = vst [vmem:[%s1563_s11 + $0x340] sm:$0xff] %v559_v51  ;;  %1018 = vst [vmem:[%s1563_s11 + $0x350] sm:$0xff] %v672_v54 }
 0x13a   : > { %1017 = vst [vmem:[%s1563_s11 + $0x348] sm:$0xff] %v561_v55  ;;  %1019 = vst [vmem:[%s1563_s11 + $0x358] sm:$0xff] %v674_v57 }
 0x13c   : > { %v564_v59 = vpop.f32.mrb[28].mxu0  ;;  %v677_v62 = vpop.f32.mrb[28].mxu1 }
 0x13d   : > { %v565_v61 = vadd.f32 %v564_v59, %v1549_v0  ;;  %v566_v63 = vpop.f32.mrb[29].mxu0  ;;  %v678_v5 = vadd.f32 %v677_v62, %v1552_v1  ;;  %v679_v7 = vpop.f32.mrb[29].mxu1 }
 0x13e   : > { %v567_v6 = vadd.f32 %v566_v63, %v1555_v2  ;;  %v568_v8 = vpop.f32.mrb[30].mxu0  ;;  %v680_v11 = vadd.f32 %v679_v7, %v1558_v3  ;;  %v681_v13 = vpop.f32.mrb[30].mxu1 }
 0x13f   : > { %1024 = vst [vmem:[%s1563_s11 + $0x380] sm:$0xff] %v565_v61  ;;  %v569_v12 = vadd.f32 %v568_v8, %v1549_v0  ;;  %v570_v14 = vpop.f32.mrb[31].mxu0  ;;  %1026 = vst [vmem:[%s1563_s11 + $0x390] sm:$0xff] %v678_v5  ;;  %v682_v16 = vadd.f32 %v681_v13, %v1552_v1  ;;  %v683_v18 = vpop.f32.mrb[31].mxu1  ;;  %v1697_v0 = vrot.slane %v1542_v60, %v301_v9 }
 0x140   : > { %1025 = vst [vmem:[%s1563_s11 + $0x388] sm:$0xff] %v567_v6  ;;  %v571_v17 = vadd.f32 %v570_v14, %v1555_v2  ;;  %1027 = vst [vmem:[%s1563_s11 + $0x398] sm:$0xff] %v680_v11  ;;  %v684_v19 = vadd.f32 %v683_v18, %v1558_v3  ;;  %v1704_v1 = vrot.slane %v1542_v60, %v305_v15 }
 0x141   : > { %1032 = vst [vmem:[%s1563_s11 + $0x3c0] sm:$0xff] %v569_v12  ;;  %1034 = vst [vmem:[%s1563_s11 + $0x3d0] sm:$0xff] %v682_v16 }
 0x142   : > { %1033 = vst [vmem:[%s1563_s11 + $0x3c8] sm:$0xff] %v571_v17  ;;  %1035 = vst [vmem:[%s1563_s11 + $0x3d8] sm:$0xff] %v684_v19 }
 0x144   : > { %v720_v2 = vpop.f32.mrb[32].mxu0  ;;  %v833_v21 = vpop.f32.mrb[32].mxu1 }
 0x145   : > { %v721_v3 = vadd.f32 %v720_v2, %v1692_v20  ;;  %v722_v22 = vpop.f32.mrb[33].mxu0  ;;  %v834_v23 = vadd.f32 %v833_v21, %v1697_v0  ;;  %v835_v25 = vpop.f32.mrb[33].mxu1 }
 0x146   : > { %v723_v24 = vadd.f32 %v722_v22, %v1700_v58  ;;  %v724_v26 = vpop.f32.mrb[34].mxu0  ;;  %v836_v60 = vadd.f32 %v835_v25, %v1704_v1  ;;  %v837_v28 = vpop.f32.mrb[34].mxu1 }
 0x147   : > { %916 = vst [vmem:[%s1563_s11 + $0x20] sm:$0xff] %v721_v3  ;;  %v725_v27 = vadd.f32 %v724_v26, %v1692_v20  ;;  %v726_v29 = vpop.f32.mrb[35].mxu0  ;;  %918 = vst [vmem:[%s1563_s11 + $0x30] sm:$0xff] %v834_v23  ;;  %v838_v30 = vadd.f32 %v837_v28, %v1697_v0  ;;  %v839_v32 = vpop.f32.mrb[35].mxu1 }
 0x148   : > { %917 = vst [vmem:[%s1563_s11 + $0x28] sm:$0xff] %v723_v24  ;;  %v727_v31 = vadd.f32 %v726_v29, %v1700_v58  ;;  %919 = vst [vmem:[%s1563_s11 + $0x38] sm:$0xff] %v836_v60  ;;  %v840_v33 = vadd.f32 %v839_v32, %v1704_v1 }
 0x149   : > { %924 = vst [vmem:[%s1563_s11 + $0x60] sm:$0xff] %v725_v27  ;;  %926 = vst [vmem:[%s1563_s11 + $0x70] sm:$0xff] %v838_v30 }
 0x14a   : > { %925 = vst [vmem:[%s1563_s11 + $0x68] sm:$0xff] %v727_v31  ;;  %927 = vst [vmem:[%s1563_s11 + $0x78] sm:$0xff] %v840_v33 }
 0x14c   : > { %v730_v34 = vpop.f32.mrb[36].mxu0  ;;  %v843_v36 = vpop.f32.mrb[36].mxu1 }
 0x14d   : > { %v731_v35 = vadd.f32 %v730_v34, %v1692_v20  ;;  %v732_v37 = vpop.f32.mrb[37].mxu0  ;;  %v844_v38 = vadd.f32 %v843_v36, %v1697_v0  ;;  %v845_v40 = vpop.f32.mrb[37].mxu1 }
 0x14e   : > { %v733_v39 = vadd.f32 %v732_v37, %v1700_v58  ;;  %v734_v41 = vpop.f32.mrb[38].mxu0  ;;  %v846_v42 = vadd.f32 %v845_v40, %v1704_v1  ;;  %v847_v44 = vpop.f32.mrb[38].mxu1 }
 0x14f   : > { %932 = vst [vmem:[%s1563_s11 + $0xa0] sm:$0xff] %v731_v35  ;;  %v735_v43 = vadd.f32 %v734_v41, %v1692_v20  ;;  %v736_v45 = vpop.f32.mrb[39].mxu0  ;;  %934 = vst [vmem:[%s1563_s11 + $0xb0] sm:$0xff] %v844_v38  ;;  %v848_v46 = vadd.f32 %v847_v44, %v1697_v0  ;;  %v849_v48 = vpop.f32.mrb[39].mxu1 }
 0x150   : > { %933 = vst [vmem:[%s1563_s11 + $0xa8] sm:$0xff] %v733_v39  ;;  %v737_v47 = vadd.f32 %v736_v45, %v1700_v58  ;;  %935 = vst [vmem:[%s1563_s11 + $0xb8] sm:$0xff] %v846_v42  ;;  %v850_v49 = vadd.f32 %v849_v48, %v1704_v1 }
 0x151   : > { %940 = vst [vmem:[%s1563_s11 + $0xe0] sm:$0xff] %v735_v43  ;;  %942 = vst [vmem:[%s1563_s11 + $0xf0] sm:$0xff] %v848_v46 }
 0x152   : > { %941 = vst [vmem:[%s1563_s11 + $0xe8] sm:$0xff] %v737_v47  ;;  %943 = vst [vmem:[%s1563_s11 + $0xf8] sm:$0xff] %v850_v49 }
 0x154   : > { %v740_v50 = vpop.f32.mrb[40].mxu0  ;;  %v853_v52 = vpop.f32.mrb[40].mxu1 }
 0x155   : > { %v741_v51 = vadd.f32 %v740_v50, %v1692_v20  ;;  %v742_v53 = vpop.f32.mrb[41].mxu0  ;;  %v854_v54 = vadd.f32 %v853_v52, %v1697_v0  ;;  %v855_v56 = vpop.f32.mrb[41].mxu1 }
 0x156   : > { %v743_v55 = vadd.f32 %v742_v53, %v1700_v58  ;;  %v744_v57 = vpop.f32.mrb[42].mxu0  ;;  %v856_v59 = vadd.f32 %v855_v56, %v1704_v1  ;;  %v857_v62 = vpop.f32.mrb[42].mxu1 }
 0x157   : > { %948 = vst [vmem:[%s1563_s11 + $0x120] sm:$0xff] %v741_v51  ;;  %v745_v61 = vadd.f32 %v744_v57, %v1692_v20  ;;  %v746_v63 = vpop.f32.mrb[43].mxu0  ;;  %950 = vst [vmem:[%s1563_s11 + $0x130] sm:$0xff] %v854_v54  ;;  %v858_v4 = vadd.f32 %v857_v62, %v1697_v0  ;;  %v859_v6 = vpop.f32.mrb[43].mxu1 }
 0x158   : > { %949 = vst [vmem:[%s1563_s11 + $0x128] sm:$0xff] %v743_v55  ;;  %v747_v5 = vadd.f32 %v746_v63, %v1700_v58  ;;  %951 = vst [vmem:[%s1563_s11 + $0x138] sm:$0xff] %v856_v59  ;;  %v860_v7 = vadd.f32 %v859_v6, %v1704_v1 }
 0x159   : > { %956 = vst [vmem:[%s1563_s11 + $0x160] sm:$0xff] %v745_v61  ;;  %958 = vst [vmem:[%s1563_s11 + $0x170] sm:$0xff] %v858_v4 }
 0x15a   : > { %957 = vst [vmem:[%s1563_s11 + $0x168] sm:$0xff] %v747_v5  ;;  %959 = vst [vmem:[%s1563_s11 + $0x178] sm:$0xff] %v860_v7 }
 0x15c   : > { %v750_v8 = vpop.f32.mrb[44].mxu0  ;;  %v863_v10 = vpop.f32.mrb[44].mxu1 }
 0x15d   : > { %v751_v9 = vadd.f32 %v750_v8, %v1692_v20  ;;  %v752_v11 = vpop.f32.mrb[45].mxu0  ;;  %v864_v12 = vadd.f32 %v863_v10, %v1697_v0  ;;  %v865_v14 = vpop.f32.mrb[45].mxu1 }
 0x15e   : > { %v753_v13 = vadd.f32 %v752_v11, %v1700_v58  ;;  %v754_v15 = vpop.f32.mrb[46].mxu0  ;;  %v866_v16 = vadd.f32 %v865_v14, %v1704_v1  ;;  %v867_v18 = vpop.f32.mrb[46].mxu1 }
 0x15f   : > { %964 = vst [vmem:[%s1563_s11 + $0x1a0] sm:$0xff] %v751_v9  ;;  %v755_v17 = vadd.f32 %v754_v15, %v1692_v20  ;;  %v756_v19 = vpop.f32.mrb[47].mxu0  ;;  %966 = vst [vmem:[%s1563_s11 + $0x1b0] sm:$0xff] %v864_v12  ;;  %v868_v2 = vadd.f32 %v867_v18, %v1697_v0  ;;  %v869_v21 = vpop.f32.mrb[47].mxu1 }
 0x160   : > { %965 = vst [vmem:[%s1563_s11 + $0x1a8] sm:$0xff] %v753_v13  ;;  %v757_v3 = vadd.f32 %v756_v19, %v1700_v58  ;;  %967 = vst [vmem:[%s1563_s11 + $0x1b8] sm:$0xff] %v866_v16  ;;  %v870_v22 = vadd.f32 %v869_v21, %v1704_v1 }
 0x161   : > { %972 = vst [vmem:[%s1563_s11 + $0x1e0] sm:$0xff] %v755_v17  ;;  %974 = vst [vmem:[%s1563_s11 + $0x1f0] sm:$0xff] %v868_v2 }
 0x162   : > { %973 = vst [vmem:[%s1563_s11 + $0x1e8] sm:$0xff] %v757_v3  ;;  %975 = vst [vmem:[%s1563_s11 + $0x1f8] sm:$0xff] %v870_v22 }
 0x164   : > { %v760_v23 = vpop.f32.mrb[48].mxu0  ;;  %v873_v25 = vpop.f32.mrb[48].mxu1 }
 0x165   : > { %v761_v24 = vadd.f32 %v760_v23, %v1692_v20  ;;  %v762_v26 = vpop.f32.mrb[49].mxu0  ;;  %v874_v60 = vadd.f32 %v873_v25, %v1697_v0  ;;  %v875_v28 = vpop.f32.mrb[49].mxu1 }
 0x166   : > { %v763_v27 = vadd.f32 %v762_v26, %v1700_v58  ;;  %v764_v29 = vpop.f32.mrb[50].mxu0  ;;  %v876_v30 = vadd.f32 %v875_v28, %v1704_v1  ;;  %v877_v32 = vpop.f32.mrb[50].mxu1 }
 0x167   : > { %980 = vst [vmem:[%s1563_s11 + $0x220] sm:$0xff] %v761_v24  ;;  %v765_v31 = vadd.f32 %v764_v29, %v1692_v20  ;;  %v766_v33 = vpop.f32.mrb[51].mxu0  ;;  %982 = vst [vmem:[%s1563_s11 + $0x230] sm:$0xff] %v874_v60  ;;  %v878_v34 = vadd.f32 %v877_v32, %v1697_v0  ;;  %v879_v36 = vpop.f32.mrb[51].mxu1 }
 0x168   : > { %981 = vst [vmem:[%s1563_s11 + $0x228] sm:$0xff] %v763_v27  ;;  %v767_v35 = vadd.f32 %v766_v33, %v1700_v58  ;;  %983 = vst [vmem:[%s1563_s11 + $0x238] sm:$0xff] %v876_v30  ;;  %v880_v37 = vadd.f32 %v879_v36, %v1704_v1 }
 0x169   : > { %988 = vst [vmem:[%s1563_s11 + $0x260] sm:$0xff] %v765_v31  ;;  %990 = vst [vmem:[%s1563_s11 + $0x270] sm:$0xff] %v878_v34 }
 0x16a   : > { %989 = vst [vmem:[%s1563_s11 + $0x268] sm:$0xff] %v767_v35  ;;  %991 = vst [vmem:[%s1563_s11 + $0x278] sm:$0xff] %v880_v37 }
 0x16c   : > { %v770_v38 = vpop.f32.mrb[52].mxu0  ;;  %v883_v40 = vpop.f32.mrb[52].mxu1 }
 0x16d   : > { %v771_v39 = vadd.f32 %v770_v38, %v1692_v20  ;;  %v772_v41 = vpop.f32.mrb[53].mxu0  ;;  %v884_v42 = vadd.f32 %v883_v40, %v1697_v0  ;;  %v885_v44 = vpop.f32.mrb[53].mxu1 }
 0x16e   : > { %v773_v43 = vadd.f32 %v772_v41, %v1700_v58  ;;  %v774_v45 = vpop.f32.mrb[54].mxu0  ;;  %v886_v46 = vadd.f32 %v885_v44, %v1704_v1  ;;  %v887_v48 = vpop.f32.mrb[54].mxu1 }
 0x16f   : > { %996 = vst [vmem:[%s1563_s11 + $0x2a0] sm:$0xff] %v771_v39  ;;  %v775_v47 = vadd.f32 %v774_v45, %v1692_v20  ;;  %v776_v49 = vpop.f32.mrb[55].mxu0  ;;  %998 = vst [vmem:[%s1563_s11 + $0x2b0] sm:$0xff] %v884_v42  ;;  %v888_v50 = vadd.f32 %v887_v48, %v1697_v0  ;;  %v889_v52 = vpop.f32.mrb[55].mxu1 }
 0x170   : > { %997 = vst [vmem:[%s1563_s11 + $0x2a8] sm:$0xff] %v773_v43  ;;  %v777_v51 = vadd.f32 %v776_v49, %v1700_v58  ;;  %999 = vst [vmem:[%s1563_s11 + $0x2b8] sm:$0xff] %v886_v46  ;;  %v890_v53 = vadd.f32 %v889_v52, %v1704_v1 }
 0x171   : > { %1004 = vst [vmem:[%s1563_s11 + $0x2e0] sm:$0xff] %v775_v47  ;;  %1006 = vst [vmem:[%s1563_s11 + $0x2f0] sm:$0xff] %v888_v50 }
 0x172   : > { %1005 = vst [vmem:[%s1563_s11 + $0x2e8] sm:$0xff] %v777_v51  ;;  %1007 = vst [vmem:[%s1563_s11 + $0x2f8] sm:$0xff] %v890_v53 }
 0x174   : > { %v780_v54 = vpop.f32.mrb[56].mxu0  ;;  %v893_v56 = vpop.f32.mrb[56].mxu1 }
 0x175   : > { %v781_v55 = vadd.f32 %v780_v54, %v1692_v20  ;;  %v782_v57 = vpop.f32.mrb[57].mxu0  ;;  %v894_v59 = vadd.f32 %v893_v56, %v1697_v0  ;;  %v895_v62 = vpop.f32.mrb[57].mxu1 }
 0x176   : > { %v783_v61 = vadd.f32 %v782_v57, %v1700_v58  ;;  %v784_v63 = vpop.f32.mrb[58].mxu0  ;;  %v896_v4 = vadd.f32 %v895_v62, %v1704_v1  ;;  %v897_v6 = vpop.f32.mrb[58].mxu1 }
 0x177   : > { %1012 = vst [vmem:[%s1563_s11 + $0x320] sm:$0xff] %v781_v55  ;;  %v785_v5 = vadd.f32 %v784_v63, %v1692_v20  ;;  %v786_v7 = vpop.f32.mrb[59].mxu0  ;;  %1014 = vst [vmem:[%s1563_s11 + $0x330] sm:$0xff] %v894_v59  ;;  %v898_v8 = vadd.f32 %v897_v6, %v1697_v0  ;;  %v899_v10 = vpop.f32.mrb[59].mxu1 }
 0x178   : > { %1013 = vst [vmem:[%s1563_s11 + $0x328] sm:$0xff] %v783_v61  ;;  %v787_v9 = vadd.f32 %v786_v7, %v1700_v58  ;;  %1015 = vst [vmem:[%s1563_s11 + $0x338] sm:$0xff] %v896_v4  ;;  %v900_v11 = vadd.f32 %v899_v10, %v1704_v1 }
 0x179   : > { %1020 = vst [vmem:[%s1563_s11 + $0x360] sm:$0xff] %v785_v5  ;;  %1022 = vst [vmem:[%s1563_s11 + $0x370] sm:$0xff] %v898_v8 }
 0x17a   : > { %1021 = vst [vmem:[%s1563_s11 + $0x368] sm:$0xff] %v787_v9  ;;  %1023 = vst [vmem:[%s1563_s11 + $0x378] sm:$0xff] %v900_v11 }
 0x17c   : > { %v790_v12 = vpop.f32.mrb[60].mxu0  ;;  %v903_v14 = vpop.f32.mrb[60].mxu1 }
 0x17d   : > { %v791_v13 = vadd.f32 %v790_v12, %v1692_v20  ;;  %v792_v15 = vpop.f32.mrb[61].mxu0  ;;  %v904_v16 = vadd.f32 %v903_v14, %v1697_v0  ;;  %v905_v18 = vpop.f32.mrb[61].mxu1 }
 0x17e   : > { %v793_v17 = vadd.f32 %v792_v15, %v1700_v58  ;;  %v794_v19 = vpop.f32.mrb[62].mxu0  ;;  %v906_v2 = vadd.f32 %v905_v18, %v1704_v1  ;;  %v907_v21 = vpop.f32.mrb[62].mxu1 }
 0x17f   : > { %1028 = vst [vmem:[%s1563_s11 + $0x3a0] sm:$0xff] %v791_v13  ;;  %v795_v3 = vadd.f32 %v794_v19, %v1692_v20  ;;  %v796_v22 = vpop.f32.mrb[63].mxu0  ;;  %1030 = vst [vmem:[%s1563_s11 + $0x3b0] sm:$0xff] %v904_v16  ;;  %v908_v23 = vadd.f32 %v907_v21, %v1697_v0  ;;  %v909_v25 = vpop.f32.mrb[63].mxu1 }
 0x180   : > { %1029 = vst [vmem:[%s1563_s11 + $0x3a8] sm:$0xff] %v793_v17  ;;  %v797_v24 = vadd.f32 %v796_v22, %v1700_v58  ;;  %1031 = vst [vmem:[%s1563_s11 + $0x3b8] sm:$0xff] %v906_v2  ;;  %v910_v20 = vadd.f32 %v909_v25, %v1704_v1 }
 0x181   : > { %1036 = vst [vmem:[%s1563_s11 + $0x3e0] sm:$0xff] %v795_v3  ;;  %1038 = vst [vmem:[%s1563_s11 + $0x3f0] sm:$0xff] %v908_v23 }
 0x182   : > { %1037 = vst [vmem:[%s1563_s11 + $0x3e8] sm:$0xff] %v797_v24  ;;  %1039 = vst [vmem:[%s1563_s11 + $0x3f8] sm:$0xff] %v910_v20 }
 0x183   : > { %1268 = shalt.err (!%p1265_p7)
}
 0x184   : > { %s1269_s30 = scalar_lea.hbm %s1829_s24, 16384  ;;  %s1273_s7 = scalar_lea.hbm %s1888_s3, 32768 }
 0x185   : > { %p1270_p10 = scmp.ne.s32.totalorder %s1829_s24, %s1269_s30  ;;  %p1274_p13 = scmp.lt.u32.totalorder %s1829_s24, %s1888_s3 }
 0x186   : > { %p1275_p0 = scmp.lt.u32.totalorder %s1273_s7, %s1269_s30  ;;  %p1277_p2 = scmp.lt.u32.totalorder %s1269_s30, %s1829_s24 }
 0x187   : > { %p1271_p11 = pnand %p1270_p10, %p1383_p6 }
 0x188   : > { %p1276_p1 = por %p1275_p0, %p1274_p13 }
 0x189   : > { %p1272_p12 = pneg %p1271_p11 }
 0x18a   : > { %p1278_p3 = por %p1277_p2, %p1276_p1 }
 0x18c   : > { %p1279_p4 = pnand %p1278_p3, %p1272_p12 }
 0x18e   : > { %1282 = shalt.err (!%p1279_p4)
}
 0x18f   : > { %s1321_s10 = smov 1024   ;;  %s1322_s11 = smov 2048  }
 0x190   : > { %s1323_s17 = smov 64  }
 0x191   : > { %1204 = dma.vmem_to_hbm [thread:$0]  (%p1383_p6), %s1835_s19, 16384, %s1829_s24, %s1041_s25, %s1321_s10, %s1322_s11, %s1323_s17  }
 0x192 PF: > { %s1069_s16 = sand.u32 1, %s1305_s12   ;;  %p1207_p5 = pnand %p1133_p9, %p1387_p8 }
 0x193   : > { %s1070_s20 = scalar_lea.sflag [#allocation4], %s1069_s16 }
 0x194   : > { %1300 = dma.done.wait (!%p1207_p5), %s1070_s20, 16384  }
 0x195   : > { %1302 = vsyncadd (!%p1207_p5), %s1070_s20, 4294950912  ;;  %p13_p7 = scmp.ge.s32.totalorder %s1369_s18, 4   ;;  %s1891_s12 = smov %s1309_s13 }
 0x196   : > { %s1892_s13 = smov %s1313_s14  ;;  %s1893_s14 = smov %s1381_s21 }
 0x197   : > { %s1894_s15 = smov %s1369_s18  ;;  %15 = sbr.rel (!%p13_p7) target bundleno = 3 (0x3), region = 98 }
 0x19e   :  { %1075 = vsyncpa [#allocation4], 1 }
 0x19f   :  { %1077 = vsyncpa [#allocation4 + $0x1], 1 }

</bundles_post_ra>
